<compile_context>
chip_gen: v5e
topology: v5e:2x2
jax: 0.10.0
libtpu: 0.0.40
codegen_flags: <defaults>
</compile_context>

<pallas_src>
import jax
import jax.numpy as jnp
from jax.experimental import pallas as pl
from jax.experimental.pallas import tpu as pltpu


# Rows per tile along the lane axis.  x-tile = 2 * 131072 * 4 B = 1 MiB,
# labels/output tiles = 0.5 MiB each; ~4 MiB double-buffered, safe on
# v5e (16 MiB scoped default), v6e (32 MiB) and v7x (64 MiB physical).
_MAX_TN = 128 * 1024


def _round_up(a, b):
    return ((a + b - 1) // b) * b


def _linear_kernel(w_ref, b_ref, x_ref, y_ref):
    # w_ref: SMEM (IN,)  b_ref: SMEM (1,)  x_ref: VMEM (IN, TN)  y_ref: (1, TN)
    # VPU-only: scalar weights from SMEM broadcast against lane-dense rows.
    # Feature slices are cheap sublane slices; output store is a full,
    # unmasked 128-lane-wide vst.
    x = x_ref[...]
    y = x[0:1, :] * w_ref[0] + b_ref[0]
    for f in range(1, x.shape[0]):            # static unroll over 2 features
        y = y + x[f:f + 1, :] * w_ref[f]
    y_ref[...] = y.astype(y_ref.dtype)


def _make_loss_kernel(n_valid, tn):
    """Fused linear + masked partial sum of (labels - y) for one row tile."""

    def _loss_kernel(w_ref, b_ref, x_ref, lbl_ref, part_ref):
        x = x_ref[...]                            # (IN, TN)
        y = x[0:1, :] * w_ref[0] + b_ref[0]       # (1, TN)
        for f in range(1, x.shape[0]):
            y = y + x[f:f + 1, :] * w_ref[f]
        diff = lbl_ref[...] - y                   # (1, TN)
        # Mask the zero-padded tail rows (pad rows would contribute -b each).
        base = pl.program_id(0) * tn
        lane = jax.lax.broadcasted_iota(jnp.int32, diff.shape, 1) + base
        diff = jnp.where(lane < n_valid, diff, 0.0)
        s = jnp.sum(diff)                         # cross-lane XLU reduce
        # Lane-dense partial-sum slab; wrapper reads column 0 of each tile row.
        part_ref[...] = jnp.full(part_ref.shape, s, part_ref.dtype)

    return _loss_kernel


def toy_model1_forward(inputs, weight, bias, data_sample=None, mode="tensor"):
    """inputs: list of (2,) rows or an (N, 2) array; weight: (1, 2); bias: (1,).
    data_sample: list of (1,) targets or an (N, 1) array (only used for loss)."""
    x = jnp.stack(inputs) if isinstance(inputs, (list, tuple)) else inputs
    x = x.astype(jnp.float32)
    N, in_f = x.shape
    out_f = weight.shape[0]
    assert out_f == 1 and weight.shape[1] == in_f     # ToyModel: nn.Linear(2, 1)

    # Flatten params to 1-D for cheap SMEM residence + scalar reads.
    w_flat = weight.reshape(in_f).astype(jnp.float32)
    b_flat = bias.reshape(out_f).astype(jnp.float32)

    # Lane-dense layout: rows on the lane (last) axis, zero-padded so every
    # tile is a full (.., TN) block (TN multiple of 128).
    n128 = _round_up(N, 128)
    tn = min(_MAX_TN, n128)
    n_pad = _round_up(n128, tn)
    num_tiles = n_pad // tn

    x_t = jnp.pad(x.T, ((0, 0), (0, n_pad - N)))      # (in_f, n_pad)

    smem = pltpu.MemorySpace.SMEM
    w_spec = pl.BlockSpec((in_f,), lambda i: (0,), memory_space=smem)
    b_spec = pl.BlockSpec((out_f,), lambda i: (0,), memory_space=smem)
    x_spec = pl.BlockSpec((in_f, tn), lambda i: (0, i))

    if mode == "loss":
        labels = (jnp.stack(data_sample)
                  if isinstance(data_sample, (list, tuple)) else data_sample)
        labels = labels.astype(jnp.float32).reshape(1, N)
        lbl_t = jnp.pad(labels, ((0, 0), (0, n_pad - N)))      # (1, n_pad)

        partials = pl.pallas_call(
            _make_loss_kernel(N, tn),
            out_shape=jax.ShapeDtypeStruct((num_tiles, 128), jnp.float32),
            grid=(num_tiles,),
            in_specs=[w_spec, b_spec, x_spec,
                      pl.BlockSpec((1, tn), lambda i: (0, i))],
            out_specs=pl.BlockSpec((1, 128), lambda i: (i, 0)),
            compiler_params=pltpu.CompilerParams(
                dimension_semantics=("parallel",)),   # independent partials
        )(w_flat, b_flat, x_t, lbl_t)
        return dict(loss=jnp.sum(partials[:, 0]))

    # mode == 'tensor' (or any other string): just the linear layer output.
    y_pad = pl.pallas_call(
        _linear_kernel,
        out_shape=jax.ShapeDtypeStruct((1, n_pad), jnp.float32),
        grid=(num_tiles,),
        in_specs=[w_spec, b_spec, x_spec],
        out_specs=pl.BlockSpec((1, tn), lambda i: (0, i)),
        compiler_params=pltpu.CompilerParams(
            dimension_semantics=("parallel",)),        # rows are independent
    )(w_flat, b_flat, x_t)
    # Layout plumbing back to PyTorch's (N, 1); padded rows are dropped here.
    return y_pad[0, :N].reshape(N, out_f)


if __name__ == "__main__":
    key = jax.random.PRNGKey(0)
    k_x, k_lbl, k_w, k_b = jax.random.split(key, 4)

    N, IN, OUT = 8, 2, 1  # batch of 8 stacked samples, Linear(2, 1)

    x = jax.random.normal(k_x, (N, IN), dtype=jnp.float32)
    labels = jax.random.normal(k_lbl, (N, OUT), dtype=jnp.float32)

    # Deterministic Linear(2, 1) parameters (PyTorch layout: (out, in) + (out,))
    weight = jax.random.uniform(k_w, (OUT, IN), dtype=jnp.float32,
                                minval=-0.5, maxval=0.5)
    bias = jax.random.uniform(k_b, (OUT,), dtype=jnp.float32,
                              minval=-0.5, maxval=0.5)

    # Mirror the list-of-samples inputs that torch.stack expects.
    inputs_list = [x[i] for i in range(N)]
    data_sample_list = [labels[i] for i in range(N)]

    # mode='tensor'
    out = jax.block_until_ready(
        toy_model1_forward(inputs_list, weight, bias, data_sample_list,
                           mode="tensor"))
    # mode='loss'
    loss = jax.block_until_ready(
        toy_model1_forward(inputs_list, weight, bias, data_sample_list,
                           mode="loss")["loss"])

    # Reference check (pure JAX)
    ref_out = x @ weight.T + bias
    ref_loss = jnp.sum(labels - ref_out)
    assert jnp.allclose(out, ref_out, atol=1e-5), "tensor mode mismatch"
    assert jnp.allclose(loss, ref_loss, atol=1e-4), "loss mode mismatch"

    # Second check with a non-multiple-of-128 batch to exercise the padded /
    # masked tail path.
    N2 = 300
    x2 = jax.random.normal(k_x, (N2, IN), dtype=jnp.float32)
    lbl2 = jax.random.normal(k_lbl, (N2, OUT), dtype=jnp.float32)
    out2 = jax.block_until_ready(
        toy_model1_forward(x2, weight, bias, lbl2, mode="tensor"))
    loss2 = jax.block_until_ready(
        toy_model1_forward(x2, weight, bias, lbl2, mode="loss")["loss"])
    ref_out2 = x2 @ weight.T + bias
    ref_loss2 = jnp.sum(lbl2 - ref_out2)
    assert jnp.allclose(out2, ref_out2, atol=1e-5), "tensor mode mismatch (N=300)"
    assert jnp.allclose(loss2, ref_loss2, atol=1e-3), "loss mode mismatch (N=300)"

    print("KERNEL_OK")
</pallas_src>

<mosaic_0001>
module attributes {stable_mosaic.version = 11 : i64} {
  func.func @_linear_kernel(%arg0: i32, %arg1: memref<2xf32, #tpu.memory_space<smem>>, %arg2: memref<1xf32, #tpu.memory_space<smem>>, %arg3: memref<2x128xf32, #tpu.memory_space<vmem>>, %arg4: memref<1x128xf32, #tpu.memory_space<vmem>>) attributes {dimension_semantics = [#tpu.dimension_semantics<parallel>], iteration_bounds = array<i64: 1>, scalar_prefetch = 0 : i64, scratch_operands = 0 : i64, tpu.core_type = #tpu.core_type<tc>, window_params = [{transform_indices = @transform_0, window_bounds = array<i64: 2>}, {transform_indices = @transform_1, window_bounds = array<i64: 1>}, {transform_indices = @transform_2, window_bounds = array<i64: 2, 128>}, {transform_indices = @transform_3, window_bounds = array<i64: 1, 128>}]} {
    %c0 = arith.constant 0 : index
    %c0_0 = arith.constant 0 : index
    %0 = vector.load %arg3[%c0, %c0_0] : memref<2x128xf32, #tpu.memory_space<vmem>>, vector<2x128xf32>
    %1 = vector.extract_strided_slice %0 {offsets = [0, 0], sizes = [1, 128], strides = [1, 1]} : vector<2x128xf32> to vector<1x128xf32>
    %c0_1 = arith.constant 0 : index
    %2 = memref.load %arg1[%c0_1] : memref<2xf32, #tpu.memory_space<smem>>
    %3 = vector.broadcast %2 : f32 to vector<1x128xf32>
    %4 = arith.mulf %1, %3 : vector<1x128xf32>
    %c0_2 = arith.constant 0 : index
    %5 = memref.load %arg2[%c0_2] : memref<1xf32, #tpu.memory_space<smem>>
    %6 = vector.broadcast %5 : f32 to vector<1x128xf32>
    %7 = arith.addf %4, %6 : vector<1x128xf32>
    %8 = vector.extract_strided_slice %0 {offsets = [1, 0], sizes = [1, 128], strides = [1, 1]} : vector<2x128xf32> to vector<1x128xf32>
    %c1 = arith.constant 1 : index
    %9 = memref.load %arg1[%c1] : memref<2xf32, #tpu.memory_space<smem>>
    %10 = vector.broadcast %9 : f32 to vector<1x128xf32>
    %11 = arith.mulf %8, %10 : vector<1x128xf32>
    %12 = arith.addf %7, %11 : vector<1x128xf32>
    %c0_3 = arith.constant 0 : index
    %c0_4 = arith.constant 0 : index
    %13 = vector.load %arg4[%c0_3, %c0_4] : memref<1x128xf32, #tpu.memory_space<vmem>>, vector<1x128xf32>
    tpu.vector_store %arg4[%c0_3, %c0_4], %12 {strides = array<i32>} : memref<1x128xf32, #tpu.memory_space<vmem>>, vector<1x128xf32>,
    return
  }
  func.func @transform_0(%arg0: i32) -> i32 {
    %c0_i32 = arith.constant 0 : i32
    %c0_i32_0 = arith.constant 0 : i32
    return %c0_i32 : i32
  }
  func.func @transform_1(%arg0: i32) -> i32 {
    %c0_i32 = arith.constant 0 : i32
    %c0_i32_0 = arith.constant 0 : i32
    return %c0_i32 : i32
  }
  func.func @transform_2(%arg0: i32) -> (i32, i32) {
    %c0_i32 = arith.constant 0 : i32
    %c0_i32_0 = arith.constant 0 : i32
    return %c0_i32, %arg0 : i32, i32
  }
  func.func @transform_3(%arg0: i32) -> (i32, i32) {
    %c0_i32 = arith.constant 0 : i32
    %c0_i32_0 = arith.constant 0 : i32
    return %c0_i32, %arg0 : i32, i32
  }
}

</mosaic_0001>

<bundles_post_ra>
// kernel: tpu_custom_call.1
= control target key start
LH: loop header
LB: loop body
LE: loop exit
PB: predicated region body
PF: predicated region fallthrough
CT: control target
= control target key end

     0   :  { %9 = vsyncpa [#allocation5], 0  ;;  %s138_s0 = inlined_call_operand.hbm [shape: f32[2], index: 0, kind: input, shape index: {}]   ;;  %s139_s1 = inlined_call_operand.<no memory space> [shape: f32[1], index: 1, kind: input, shape index: {}]   ;;  %s140_s2 = inlined_call_operand.vmem [shape: f32[2,128], index: 2, kind: input, shape index: {}]   ;;  %s141_s3 = inlined_call_operand.hbm [shape: f32[1,128], index: 3, kind: output, shape index: {}]  }
   0x1   :  { %10 = vsyncpa [#allocation4], 0  ;;  %s16_s14 = sshll.u32 %s138_s0, 4  ;;  %s104_s15 = smov [#allocation3]   ;;  %s17_s14 = int_to_ptr.hbm [resolvable:$true] %s16_s14 }
   0x2   :  { %19 = dma.hbm_to_smem %s17_s14, 16, %s104_s15, [#allocation5]  }
   0x3   :  { %100 = dma.done.wait [#allocation5], 16  }
   0x4   :  { %101 = vsyncadd [#allocation5], 4294967280 }
   0x5   :  { %28 = sfence }
   0x6   :  { %s30_s16 = sld [smem:[#allocation3]]  ;;  %v29_v0 = vld [vmem:[%s140_s2] sm:$0x3]  ;;  %v34_v2 = vstv %s139_s1  ;;  %s105_s0 = smov [#allocation6]  }
   0x7   :  { %s61_s17 = sld [smem:[#allocation3 + $0x1]]  ;;  %s49_s22 = sshll.u32 %s105_s0, 4  ;;  %s50_s22 = int_to_ptr.vmem [resolvable:$true] %s49_s22 }
   0x8   :  { %s51_s25 = sshll.u32 %s141_s3, 4  ;;  %s52_s25 = int_to_ptr.hbm [resolvable:$true] %s51_s25 }
   0xc   :  { %v31_v1 = vstv %s30_s16 }
   0xd   :  { %v32_v3 = vmul.f32 %v31_v1, %v29_v0  ;;  %v37_v4 = vstv %s61_s17 }
   0xe   :  { %v38_v5 = vmul.f32 %v37_v4, %v29_v0 }
   0xf   :  { %v35_v6 = vadd.f32 %v34_v2, %v32_v3 }
  0x10   :  { %v40_v7 = vrot.slane %v38_v5, 1 }
  0x12   :  { %v42_v8 = vadd.f32 %v40_v7, %v35_v6 }
  0x14   :  { %43 = vst [vmem:[#allocation6] sm:$0x1] %v42_v8 }
  0x15   :  { %54 = dma.vmem_to_hbm [thread:$0]  %s50_s22, 16, %s52_s25, [#allocation4]  }
  0x16   :  { %102 = dma.done.wait [#allocation4], 16  }
  0x17   :  { %103 = vsyncadd [#allocation4], 4294967280 }
  0x18   :  { %59 = vsyncpa [#allocation4], 1 }
  0x19   :  { %60 = vsyncpa [#allocation5], 1 }

</bundles_post_ra>
